<compile_context>
chip_gen: v6e
topology: v6e:2x2x1
jax: 0.10.0
libtpu: 0.0.40
codegen_flags: <defaults>
</compile_context>

<pallas_src>
import math

import jax
import jax.numpy as jnp
from jax.experimental import pallas as pl
from jax.experimental.pallas import tpu as pltpu


# ---------------------------------------------------------------------------
# Kernels
# ---------------------------------------------------------------------------

def _diag_kernel_wb(wb_ref, x_ref, o_ref):
    # wb_ref: (2, tile_n). Row 0 = weight, row 1 = bias; broadcast over the
    # batch tile. VPU-only; math runs in the promoted dtype of x and params.
    w = wb_ref[0:1, :]
    b = wb_ref[1:2, :]
    o_ref[...] = (x_ref[...] * w + b).astype(o_ref.dtype)


def _diag_kernel_w(w_ref, x_ref, o_ref):
    o_ref[...] = (x_ref[...] * w_ref[...]).astype(o_ref.dtype)


# ---------------------------------------------------------------------------
# Tiling helpers
# ---------------------------------------------------------------------------

# dtype itemsize -> minimum sublane tile (f32: 8, bf16: 16, int8/fp8: 32)
_SUBLANE = {4: 8, 2: 16, 1: 32}

_LANE = 128
_MIN_GRID_STEPS = 8          # enough steps to pipeline + feed both v7x TCs
_MIN_BLOCK_BYTES = 1 << 20   # don't shrink blocks below ~1 MiB just for steps
_MAX_TILE_N = 2048           # lane-dense feature tile cap (multiple of 128)


def _hw_params():
    """Per-generation (vmem_limit_bytes, target_x_block_bytes)."""
    vmem_bytes = None
    try:
        vmem_bytes = getattr(pltpu.get_tpu_info(), "vmem_capacity_bytes", None)
    except Exception:
        vmem_bytes = None
    if vmem_bytes is None:
        try:
            kind = jax.devices()[0].device_kind.lower()
        except Exception:
            kind = ""
        is_v7 = ("v7" in kind) or ("7x" in kind)
        vmem_bytes = 64 * 1024 * 1024 if is_v7 else 128 * 1024 * 1024
    if vmem_bytes <= 64 * 1024 * 1024:
        # v7x: 64 MiB physical per TC. 4 buffers (x + out, double-buffered)
        # of ~6 MiB = 24 MiB stays under a 32 MiB scoped budget with headroom.
        return 32 * 1024 * 1024, 6 * 1024 * 1024
    # v5e / v6e: 128 MiB physical (16 / 32 MiB scoped defaults -> lift).
    # ~8 MiB blocks amortize the ~0.35 us per-step overhead into the noise.
    return 64 * 1024 * 1024, 8 * 1024 * 1024


def _lane_fold_factor(B, n):
    """Smallest k with B % k == 0 and (k*n) % 128 == 0; 1 if none / unneeded."""
    if n % _LANE == 0 or B <= 1:
        return 1
    k0 = _LANE // math.gcd(n, _LANE)
    k = k0
    while k <= B:
        if B % k == 0:
            return k
        k += k0
    return 1


def _choose_tiles(B, n, itemsize, target_block_bytes):
    """Pick (tile_b, tile_n): lane-dense, VMEM-sized, with enough grid steps."""
    sub = _SUBLANE.get(itemsize, 8)

    # Feature tile: whole feature axis when modest, else a lane-dense 128-multiple.
    tile_n = n if n <= _MAX_TILE_N else _MAX_TILE_N
    n_feat_blocks = pl.cdiv(n, tile_n)

    row_bytes = max(1, tile_n * itemsize)

    # Batch rows from the byte target (rounded down to the sublane multiple).
    rows_target = max(sub, (target_block_bytes // row_bytes) // sub * sub)

    # If that leaves too few grid steps, shrink toward _MIN_GRID_STEPS total
    # steps so the software pipeline and both v7x TensorCores engage -- but
    # never below ~_MIN_BLOCK_BYTES per block (per-step overhead amortization).
    rows = rows_target
    if pl.cdiv(B, rows) * n_feat_blocks < _MIN_GRID_STEPS:
        needed_batch_blocks = pl.cdiv(_MIN_GRID_STEPS, n_feat_blocks)
        rows_for_steps = max(
            sub, pl.cdiv(pl.cdiv(B, needed_batch_blocks), sub) * sub)
        rows_floor = max(sub, (_MIN_BLOCK_BYTES // row_bytes) // sub * sub)
        rows = min(rows_target, max(rows_for_steps, rows_floor))

    tile_b = B if rows >= B else rows
    return tile_b, tile_n


def _round_tile(user, full, quantum):
    """Clamp/round a user tile to a legal Mosaic tiling (or the full dim)."""
    user = min(int(user), full)
    if user >= full or full <= quantum:
        return full
    return max(quantum, (user // quantum) * quantum)


# ---------------------------------------------------------------------------
# Wrapper
# ---------------------------------------------------------------------------

def diagonal_linear_transform(x, weight, bias=None, *, tile_b=None, tile_n=None):
    """y = x * weight (+ bias). weight/bias shape (1, n), broadcast over leading dims."""
    orig_shape = x.shape
    n = orig_shape[-1]
    assert weight.shape == (1, n), f"weight must be (1, {n}), got {weight.shape}"
    if bias is not None:
        assert bias.shape == (1, n), f"bias must be (1, {n}), got {bias.shape}"

    # Collapse all leading dims into one long batch axis (same math, better tiling).
    x2 = x.reshape(-1, n)
    B = x2.shape[0]
    itemsize = jnp.dtype(x2.dtype).itemsize
    sub = _SUBLANE.get(itemsize, 8)

    # Lane-dense fold: if n is not a multiple of 128, fold k batch rows into the
    # lane axis so stores are unmasked full-lane vst and DMA segments are long.
    # Only applied in the auto-tiled path.
    w_arr, b_arr, Bk, nk = weight, bias, B, n
    if tile_b is None and tile_n is None:
        k = _lane_fold_factor(B, n)
        if k > 1:
            Bk, nk = B // k, k * n
            x2 = x2.reshape(Bk, nk)
            w_arr = jnp.tile(weight, (1, k))
            b_arr = None if bias is None else jnp.tile(bias, (1, k))

    vmem_limit_bytes, target_block_bytes = _hw_params()
    auto_b, auto_n = _choose_tiles(Bk, nk, itemsize, target_block_bytes)
    tb = auto_b if tile_b is None else _round_tile(tile_b, Bk, sub)
    tn = auto_n if tile_n is None else _round_tile(tile_n, nk, _LANE)

    # Feature-outer / batch-inner grid: the tiny packed parameter block index is
    # constant across the entire inner batch sweep, so it stays resident instead
    # of being re-fetched every step.
    grid = (pl.cdiv(nk, tn), pl.cdiv(Bk, tb))
    x_spec = pl.BlockSpec((tb, tn), lambda j, i: (i, j))
    out_spec = pl.BlockSpec((tb, tn), lambda j, i: (i, j))
    out_shape = jax.ShapeDtypeStruct((Bk, nk), x2.dtype)

    compiler_params = pltpu.CompilerParams(
        dimension_semantics=("parallel", "parallel"),
        vmem_limit_bytes=vmem_limit_bytes,
    )

    if b_arr is not None:
        # Pack weight+bias into one (2, nk) array: a single tiny parameter
        # stream instead of two separately pipelined (1, nk) inputs.
        wb = jnp.concatenate([w_arr, b_arr], axis=0)
        wb_spec = pl.BlockSpec((2, tn), lambda j, i: (0, j))
        y = pl.pallas_call(
            _diag_kernel_wb,
            out_shape=out_shape,
            grid_spec=pltpu.PrefetchScalarGridSpec(
                num_scalar_prefetch=0,
                grid=grid,
                in_specs=[wb_spec, x_spec],
                out_specs=out_spec,
            ),
            compiler_params=compiler_params,
        )(wb, x2)
    else:
        w_spec = pl.BlockSpec((1, tn), lambda j, i: (0, j))
        y = pl.pallas_call(
            _diag_kernel_w,
            out_shape=out_shape,
            grid_spec=pltpu.PrefetchScalarGridSpec(
                num_scalar_prefetch=0,
                grid=grid,
                in_specs=[w_spec, x_spec],
                out_specs=out_spec,
            ),
            compiler_params=compiler_params,
        )(w_arr, x2)

    return y.reshape(orig_shape)


if __name__ == "__main__":
    key = jax.random.PRNGKey(0)
    kx, kw, kb = jax.random.split(key, 3)

    # --- Primary test (module shapes: x (B, n), weight/bias (1, n)). n=32 is not
    # a multiple of 128, so the lane-dense fold kicks in ((8,32) -> (2,128)). ---
    B, n = 8, 32
    x = jax.random.normal(kx, (B, n), dtype=jnp.float32)
    weight = jax.random.normal(kw, (1, n), dtype=jnp.float32)
    bias = jax.random.normal(kb, (1, n), dtype=jnp.float32)

    y = jax.block_until_ready(diagonal_linear_transform(x, weight, bias))
    y_ref = x * weight + bias
    assert y.shape == x.shape and y.dtype == x.dtype
    assert jnp.allclose(y, y_ref, atol=1e-6, rtol=1e-6)

    # --- bias=None path ---
    y_nb = jax.block_until_ready(diagonal_linear_transform(x, weight, bias=None))
    assert jnp.allclose(y_nb, x * weight, atol=1e-6, rtol=1e-6)

    # --- Leading batch dims + lane-dense fold ((2,4,64) -> (4,128)) ---
    x3d = jax.random.normal(kx, (2, 4, 64), dtype=jnp.float32)
    w3d = jax.random.normal(kw, (1, 64), dtype=jnp.float32)
    b3d = jax.random.normal(kb, (1, 64), dtype=jnp.float32)
    y3d = jax.block_until_ready(diagonal_linear_transform(x3d, w3d, b3d))
    assert y3d.shape == x3d.shape
    assert jnp.allclose(y3d, x3d * w3d + b3d, atol=1e-6, rtol=1e-6)

    # --- Non-divisible batch + explicit tiles (cdiv / masked partial blocks,
    # feature-outer / batch-inner grid order) ---
    B2, n2 = 20, 256
    x2 = jax.random.normal(kx, (B2, n2), dtype=jnp.float32)
    w2 = jax.random.normal(kw, (1, n2), dtype=jnp.float32)
    b2 = jax.random.normal(kb, (1, n2), dtype=jnp.float32)
    y2 = jax.block_until_ready(
        diagonal_linear_transform(x2, w2, b2, tile_b=8, tile_n=128))
    assert jnp.allclose(y2, x2 * w2 + b2, atol=1e-6, rtol=1e-6)

    # --- No valid fold (B=7, n=96): falls back to full-dim (masked-lane) blocks ---
    x4 = jax.random.normal(kx, (7, 96), dtype=jnp.float32)
    w4 = jax.random.normal(kw, (1, 96), dtype=jnp.float32)
    b4 = jax.random.normal(kb, (1, 96), dtype=jnp.float32)
    y4 = jax.block_until_ready(diagonal_linear_transform(x4, w4, b4))
    assert jnp.allclose(y4, x4 * w4 + b4, atol=1e-6, rtol=1e-6)

    # --- Mixed precision: bf16 activations, f32 params (output cast path) ---
    B5, n5 = 16, 64
    x5 = jax.random.normal(kx, (B5, n5), dtype=jnp.bfloat16)
    w5 = jax.random.normal(kw, (1, n5), dtype=jnp.float32)
    b5 = jax.random.normal(kb, (1, n5), dtype=jnp.float32)
    y5 = jax.block_until_ready(diagonal_linear_transform(x5, w5, b5))
    y5_ref = (x5.astype(jnp.float32) * w5 + b5).astype(jnp.bfloat16)
    assert y5.dtype == jnp.bfloat16
    assert jnp.allclose(y5.astype(jnp.float32), y5_ref.astype(jnp.float32),
                        atol=5e-2, rtol=5e-2)

    print("KERNEL_OK")
</pallas_src>

<mosaic_0001>
module attributes {stable_mosaic.version = 11 : i64} {
  func.func @_diag_kernel_wb(%arg0: i32, %arg1: i32, %arg2: memref<2x128xf32, #tpu.memory_space<vmem>>, %arg3: memref<2x128xf32, #tpu.memory_space<vmem>>, %arg4: memref<2x128xf32, #tpu.memory_space<vmem>>) attributes {dimension_semantics = [#tpu.dimension_semantics<parallel>, #tpu.dimension_semantics<parallel>], iteration_bounds = array<i64: 1, 1>, scalar_prefetch = 0 : i64, scratch_operands = 0 : i64, tpu.core_type = #tpu.core_type<tc>, window_params = [{transform_indices = @transform_0, window_bounds = array<i64: 2, 128>}, {transform_indices = @transform_1, window_bounds = array<i64: 2, 128>}, {transform_indices = @transform_2, window_bounds = array<i64: 2, 128>}]} {
    %c0 = arith.constant 0 : index
    %c0_0 = arith.constant 0 : index
    %0 = vector.load %arg2[%c0, %c0_0] : memref<2x128xf32, #tpu.memory_space<vmem>>, vector<1x128xf32>
    %c1 = arith.constant 1 : index
    %c0_1 = arith.constant 0 : index
    %1 = vector.load %arg2[%c1, %c0_1] : memref<2x128xf32, #tpu.memory_space<vmem>>, vector<1x128xf32>
    %c0_2 = arith.constant 0 : index
    %c0_3 = arith.constant 0 : index
    %2 = vector.load %arg3[%c0_2, %c0_3] : memref<2x128xf32, #tpu.memory_space<vmem>>, vector<2x128xf32>
    %3 = vector.broadcast %0 : vector<1x128xf32> to vector<2x128xf32>
    %4 = arith.mulf %2, %3 : vector<2x128xf32>
    %5 = vector.broadcast %1 : vector<1x128xf32> to vector<2x128xf32>
    %6 = arith.addf %4, %5 : vector<2x128xf32>
    %c0_4 = arith.constant 0 : index
    %c0_5 = arith.constant 0 : index
    %7 = vector.load %arg4[%c0_4, %c0_5] : memref<2x128xf32, #tpu.memory_space<vmem>>, vector<2x128xf32>
    tpu.vector_store %arg4[%c0_4, %c0_5], %6 {strides = array<i32>} : memref<2x128xf32, #tpu.memory_space<vmem>>, vector<2x128xf32>,
    return
  }
  func.func @transform_0(%arg0: i32, %arg1: i32) -> (i32, i32) {
    %c0_i32 = arith.constant 0 : i32
    %c0_i32_0 = arith.constant 0 : i32
    return %c0_i32, %arg0 : i32, i32
  }
  func.func @transform_1(%arg0: i32, %arg1: i32) -> (i32, i32) {
    %c0_i32 = arith.constant 0 : i32
    return %arg1, %arg0 : i32, i32
  }
  func.func @transform_2(%arg0: i32, %arg1: i32) -> (i32, i32) {
    %c0_i32 = arith.constant 0 : i32
    return %arg1, %arg0 : i32, i32
  }
}

</mosaic_0001>

<bundles_post_ra>
// kernel: tpu_custom_call.1
= control target key start
LH: loop header
LB: loop body
LE: loop exit
PB: predicated region body
PF: predicated region fallthrough
CT: control target
= control target key end

     0   :  { %7 = vsyncpa [#allocation3], 0  ;;  %s164_s0 = inlined_call_operand.hbm [shape: f32[2,128], index: 0, kind: input, shape index: {}]   ;;  %s165_s1 = inlined_call_operand.hbm [shape: f32[2,128], index: 1, kind: input, shape index: {}]   ;;  %s166_s2 = inlined_call_operand.hbm [shape: f32[2,128], index: 2, kind: output, shape index: {}]  }
   0x1   :  { %8 = vsyncpa [#allocation6], 0 }
   0x2   :  { %9 = vsyncpa [#allocation4], 0  ;;  %s137_s9 = smov [#allocation2]   ;;  %s138_s11 = smov [#allocation5]  }
   0x3   :  { %s16_s10 = sshll.u32 %s137_s9, 4  ;;  %s26_s12 = sshll.u32 %s138_s11, 4  ;;  %s17_s10 = int_to_ptr.vmem [resolvable:$true] %s16_s10  ;;  %s27_s12 = int_to_ptr.vmem [resolvable:$true] %s26_s12 }
   0x4   :  { %s79_s13 = scalar_lea.vmem %s17_s10, 32  ;;  %p84_p1 = scmp.lt.s32.totalorder %s17_s10, %s17_s10 }
   0x5   :  { %p80_p0 = scmp.ne.s32.totalorder %s17_s10, %s79_s13  ;;  %p85_p2 = scmp.lt.s32.totalorder %s79_s13, %s79_s13 }
   0x7   :  { %p86_p3 = por %p85_p2, %p84_p1 }
   0x9   :  { %p87_p4 = pnand %p86_p3, %p80_p0 }
   0xb   :  { %90 = shalt.err (!%p87_p4)
}
   0xc   :  { %19 = dma.hbm_to_vmem [thread:$0]  %s164_s0, 32, %s17_s10, [#allocation3]  }
   0xd   :  { %s99_s16 = scalar_lea.vmem %s27_s12, 32  ;;  %p104_p6 = scmp.lt.s32.totalorder %s27_s12, %s27_s12 }
   0xe   :  { %p100_p5 = scmp.ne.s32.totalorder %s27_s12, %s99_s16  ;;  %p105_p7 = scmp.lt.s32.totalorder %s99_s16, %s99_s16 }
  0x10   :  { %p106_p8 = por %p105_p7, %p104_p6 }
  0x12   :  { %p107_p9 = pnand %p106_p8, %p100_p5 }
  0x14   :  { %110 = shalt.err (!%p107_p9)
}
  0x15   :  { %29 = dma.hbm_to_vmem [thread:$0]  %s165_s1, 32, %s27_s12, [#allocation6]  }
  0x16   :  { %131 = dma.done.wait [#allocation3], 32  }
  0x17   :  { %132 = vsyncadd [#allocation3], 4294967264 }
  0x18   :  { %133 = dma.done.wait [#allocation6], 32  }
  0x19   :  { %134 = vsyncadd [#allocation6], 4294967264  ;;  %s139_s19 = smov [#allocation7]   ;;  %v66_v0 = vld [vmem:[#allocation2] ss:$0 sm:$0xff] }
  0x1a   :  { %s56_s20 = sshll.u32 %s139_s19, 4  ;;  %v67_v1 = vld [vmem:[#allocation2 + $0x1] ss:$0 sm:$0xff]  ;;  %v38_v2 = vld [vmem:[#allocation5] sm:$0x3]  ;;  %s57_s20 = int_to_ptr.vmem [resolvable:$true] %s56_s20 }
  0x1b   :  { %v43_v3 = vmul.f32 %v66_v0, %v38_v2  ;;  %s111_s0 = scalar_lea.vmem %s57_s20, 32  ;;  %p116_p11 = scmp.lt.s32.totalorder %s57_s20, %s57_s20 }
  0x1c   :  { %p112_p10 = scmp.ne.s32.totalorder %s57_s20, %s111_s0  ;;  %p117_p12 = scmp.lt.s32.totalorder %s111_s0, %s111_s0 }
  0x1d   :  { %v48_v4 = vadd.f32 %v67_v1, %v43_v3 }
  0x1e   :  { %p118_p13 = por %p117_p12, %p116_p11 }
  0x1f   :  { %49 = vst [vmem:[#allocation7] sm:$0x3] %v48_v4 }
  0x20   :  { %p119_p0 = pnand %p118_p13, %p112_p10 }
  0x22   :  { %122 = shalt.err (!%p119_p0)
}
  0x23   :  { %59 = dma.vmem_to_hbm [thread:$0]  %s57_s20, 32, %s166_s2, [#allocation4]  }
  0x24   :  { %135 = dma.done.wait [#allocation4], 32  }
  0x25   :  { %136 = vsyncadd [#allocation4], 4294967264 }
  0x26   :  { %63 = vsyncpa [#allocation3], 1 }
  0x27   :  { %64 = vsyncpa [#allocation6], 1 }
  0x28   :  { %65 = vsyncpa [#allocation4], 1 }

</bundles_post_ra>
